<compile_context>
chip_gen: v5e
topology: v5e:2x2
jax: 0.10.0
libtpu: 0.0.40
codegen_flags: <defaults>
</compile_context>

<pallas_src>
import functools

import jax
import jax.numpy as jnp
from jax.experimental import pallas as pl
from jax.experimental.pallas import tpu as pltpu


def _round_up(x, m):
    return ((x + m - 1) // m) * m


# -----------------------------------------------------------------------------
# Kernel 1: pointwise (1x1) conv == row-tiled matmul + bias
# -----------------------------------------------------------------------------
def _matmul_bias_kernel(x_ref, w_ref, b_ref, o_ref, *, relu):
    y = jnp.dot(x_ref[...], w_ref[...], preferred_element_type=jnp.float32)
    y = y + b_ref[...]
    if relu:
        y = jnp.maximum(y, 0.0)
    o_ref[...] = y.astype(o_ref.dtype)


def pointwise_conv_nhwc(x, w, b, relu=False, block_rows=512):
    """x: (B,H,W,Cin) f32, w: (Cin,Cout), b: (Cout,) -> (B,H,W,Cout) f32."""
    B, H, W, Cin = x.shape
    Cout = w.shape[1]
    M = B * H * W
    tm = min(block_rows, _round_up(M, 8))
    Mp = _round_up(M, tm)
    x2 = x.reshape(M, Cin)
    if Mp != M:
        x2 = jnp.pad(x2, ((0, Mp - M), (0, 0)))
    out = pl.pallas_call(
        functools.partial(_matmul_bias_kernel, relu=relu),
        out_shape=jax.ShapeDtypeStruct((Mp, Cout), jnp.float32),
        grid=(Mp // tm,),
        in_specs=[
            pl.BlockSpec((tm, Cin), lambda i: (i, 0)),
            pl.BlockSpec((Cin, Cout), lambda i: (0, 0)),
            pl.BlockSpec((1, Cout), lambda i: (0, 0)),
        ],
        out_specs=pl.BlockSpec((tm, Cout), lambda i: (i, 0)),
        compiler_params=pltpu.CompilerParams(
            dimension_semantics=("parallel",),
            vmem_limit_bytes=64 * 1024 * 1024),
    )(x2, w, b.reshape(1, Cout))
    return out[:M].reshape(B, H, W, Cout)


# -----------------------------------------------------------------------------
# Kernel 2: fused involution (weight-map matmuls + unfold*weight tap sum)
# -----------------------------------------------------------------------------
def _pick_tw(WP, C, TH=8):
    """Largest W-chunk (multiple of 8, dividing WP) keeping the f32 accumulator
    within ~16 vregs so it stays register resident (no spills in the tap loop)."""
    lane_cols = (C + 127) // 128
    tw = 8 * max(1, 16 // (TH * lane_cols))
    tw = min(tw, WP)
    while WP % tw:
        tw -= 8
    return max(tw, 8)


def _involution_fused_kernel(x_hbm, w1_ref, b1_ref, w2_ref, b2_ref, exp_ref,
                             out_ref, xwin_ref, wm_ref, sem,
                             *, TH, TW, K, G, GE, C, pad, WP):
    b = pl.program_id(0)
    h = pl.program_id(1)
    nH = pl.num_programs(1)
    nW = WP // TW
    R = TH + 2 * pad            # rows of the halo'd strip
    S = WP + 2 * pad            # padded width of the strip

    # ---- halo'd input row strip: manual DMA from HBM (no HBM zero-pad) ----
    center = pltpu.make_async_copy(
        x_hbm.at[b, pl.ds(h * TH, TH)],
        xwin_ref.at[pl.ds(pad, TH), pl.ds(pad, WP)],
        sem.at[0])
    center.start()

    @pl.when(h > 0)
    def _():
        top = pltpu.make_async_copy(
            x_hbm.at[b, pl.ds(h * TH - pad, pad)],
            xwin_ref.at[pl.ds(0, pad), pl.ds(pad, WP)],
            sem.at[1])
        top.start()
        top.wait()

    @pl.when(h < nH - 1)
    def _():
        bot = pltpu.make_async_copy(
            x_hbm.at[b, pl.ds((h + 1) * TH, pad)],
            xwin_ref.at[pl.ds(pad + TH, pad), pl.ds(pad, WP)],
            sem.at[2])
        bot.start()
        bot.wait()

    center.wait()
    # TODO(synk): double-buffer the strip across grid steps once a core-safe
    # priming scheme is in place (DMA is ~20% of the step at prod sizes).

    # zero-fill the out-of-image halo regions (the conv's implicit zero pad)
    @pl.when(h == 0)
    def _():
        xwin_ref[pl.ds(0, pad), :, :] = jnp.zeros((pad, S, C), jnp.float32)

    @pl.when(h == nH - 1)
    def _():
        xwin_ref[pl.ds(pad + TH, pad), :, :] = jnp.zeros((pad, S, C), jnp.float32)

    zcol = jnp.zeros((R, pad, C), jnp.float32)
    xwin_ref[:, pl.ds(0, pad), :] = zcol
    xwin_ref[:, pl.ds(pad + WP, pad), :] = zcol

    w1 = w1_ref[...]
    b1 = b1_ref[...]
    w2 = w2_ref[...]
    b2 = b2_ref[...]
    expand = exp_ref[...]

    # ---- per W-chunk: fused weight-map matmuls + register-resident tap FMA -
    @pl.loop(0, nW)
    def _(ci):
        w0 = pl.multiple_of(ci * TW, 8)

        # dynamic per-pixel kernel (conv1 + folded BN + ReLU, then conv2) on
        # the MXU, straight from the already-resident strip rows.
        xc = xwin_ref[pl.ds(pad, TH), pl.ds(pad + w0, TW), :].reshape(TH * TW, C)
        t = jnp.dot(xc, w1, preferred_element_type=jnp.float32)
        t = jnp.maximum(t + b1, 0.0)
        wm_ref[...] = jnp.dot(t, w2, preferred_element_type=jnp.float32) + b2

        # unfold * weight, summed over K*K taps.  Group -> channel replication
        # is a one-hot matmul (MXU); the VPU inner loop is pure full-lane FMA.
        acc = jnp.zeros((TH * TW, C), jnp.float32)
        for kh in range(K):
            for kw in range(K):
                k = kh * K + kw
                wk = jnp.dot(wm_ref[:, pl.ds(k * G, GE)], expand,
                             preferred_element_type=jnp.float32)     # (TH*TW, C)
                win = xwin_ref[pl.ds(kh, TH), pl.ds(w0 + kw, TW), :]
                acc = acc + wk * win.reshape(TH * TW, C)
        out_ref[0, :, pl.ds(w0, TW), :] = acc.reshape(TH, TW, C)


def involution_forward(x_nhwc, p, kernel_size):
    """involution(channels, kernel_size, stride=1) forward, NHWC in/out."""
    B, H, W, C = x_nhwc.shape
    K = kernel_size
    assert K % 2 == 1, "unfold padding (K-1)//2 is size preserving only for odd K"
    GC = 16
    assert C % GC == 0, "channels must be a multiple of group_channels=16"
    G = C // GC
    pad = (K - 1) // 2
    TH = 8
    assert pad <= TH, "row tile must cover the halo"
    red = p["w1"].shape[1]
    K2 = K * K

    # conv1 (1x1, no bias) + inference BatchNorm folded into weight/bias
    eps = 1e-5
    scale = p["bn_gamma"] / jnp.sqrt(p["bn_var"] + eps)
    w1f = p["w1"] * scale[None, :]
    b1f = p["bn_beta"] - p["bn_mean"] * scale

    # Permute conv2 columns from (g, k) to tap-major (k, g) order so the kernel
    # reads one contiguous per-tap group slice.
    j = jnp.arange(G * K2)
    old_col = (j % G) * K2 + (j // G)
    w2p = p["w2"][:, old_col]
    b2p = p["b2"][old_col]

    # Pad the per-tap group width up to >= 8 columns (zero columns of w2 / zero
    # rows of the replicate matrix) so the broadcast matmul has a healthy
    # contraction dim even when groups == 1.
    GE = max(G, 8)
    if GE > G:
        w2p = jnp.pad(w2p, ((0, 0), (0, GE - G)))
        b2p = jnp.pad(b2p, (0, GE - G))
    NW2 = K2 * G + (GE - G)

    # one-hot group -> channel replication matrix (runs on the MXU)
    expand = (jnp.arange(C)[None, :] // GC == jnp.arange(GE)[:, None]
              ).astype(jnp.float32)

    # Pad H to the row tile / W to a multiple of 8 with zeros.  Exact: the
    # involution zero-pads its borders anyway, and the extra rows/cols are
    # sliced off the output.  (Toy + typical FPN shapes need no padding.)
    HP = _round_up(H, TH)
    WP = _round_up(W, 8)
    if (HP, WP) != (H, W):
        x_nhwc = jnp.pad(x_nhwc, ((0, 0), (0, HP - H), (0, WP - W), (0, 0)))
    TW = _pick_tw(WP, C, TH)
    nH = HP // TH

    out = pl.pallas_call(
        functools.partial(_involution_fused_kernel, TH=TH, TW=TW, K=K, G=G,
                          GE=GE, C=C, pad=pad, WP=WP),
        out_shape=jax.ShapeDtypeStruct((B, HP, WP, C), jnp.float32),
        grid=(B, nH),
        in_specs=[
            pl.BlockSpec(memory_space=pl.ANY),                # x stays in HBM
            pl.BlockSpec((C, red), lambda b, h: (0, 0)),
            pl.BlockSpec((1, red), lambda b, h: (0, 0)),
            pl.BlockSpec((red, NW2), lambda b, h: (0, 0)),
            pl.BlockSpec((1, NW2), lambda b, h: (0, 0)),
            pl.BlockSpec((GE, C), lambda b, h: (0, 0)),
        ],
        out_specs=pl.BlockSpec((1, TH, WP, C), lambda b, h: (b, h, 0, 0)),
        scratch_shapes=[
            pltpu.VMEM((TH + 2 * pad, WP + 2 * pad, C), jnp.float32),  # strip
            pltpu.VMEM((TH * TW, NW2), jnp.float32),                   # wmap
            pltpu.SemaphoreType.DMA((3,)),
        ],
        compiler_params=pltpu.CompilerParams(
            dimension_semantics=("parallel", "parallel"),
            vmem_limit_bytes=64 * 1024 * 1024),
    )(x_nhwc, w1f, b1f.reshape(1, red), w2p, b2p.reshape(1, NW2), expand)
    return out[:, :H, :W, :]


# -----------------------------------------------------------------------------
# FPN_involution forward (NCHW in / NCHW out): start_level=0, end_level=-1,
# add_extra_convs=False
# -----------------------------------------------------------------------------
def _upsample_nearest_nhwc(x, out_h, out_w):
    B, H, W, C = x.shape
    hi = (jnp.arange(out_h) * H) // out_h      # PyTorch 'nearest' index rule
    wi = (jnp.arange(out_w) * W) // out_w
    return x[:, hi][:, :, wi]


def fpn_involution_forward(inputs_nchw, params, num_outs, kernel_size=7):
    assert len(inputs_nchw) == len(params["lateral"])
    # TODO(synk): fold the NCHW<->NHWC transposes into the lateral-conv /
    # involution kernels' index maps instead of standalone XLA transposes.
    feats = [jnp.transpose(x, (0, 2, 3, 1)) for x in inputs_nchw]

    # lateral 1x1 convs
    laterals = [pointwise_conv_nhwc(f, lp["w"], lp["b"])
                for f, lp in zip(feats, params["lateral"])]

    # top-down pathway (nearest upsample + add)
    # TODO(synk): fuse the upsample+add into the next level's kernel epilogue
    # to save one HBM read-modify-write per level.
    n = len(laterals)
    for i in range(n - 1, 0, -1):
        H, W = laterals[i - 1].shape[1:3]
        laterals[i - 1] = laterals[i - 1] + _upsample_nearest_nhwc(laterals[i], H, W)

    # fpn convs == involution(out_channels, 7, 1), fully fused per level
    outs = [involution_forward(laterals[i], params["inv"][i], kernel_size)
            for i in range(n)]

    # extra output levels (add_extra_convs=False -> max_pool2d(k=1, stride=2))
    for _ in range(num_outs - n):
        outs.append(outs[-1][:, ::2, ::2, :])

    return tuple(jnp.transpose(o, (0, 3, 1, 2)) for o in outs)


# -----------------------------------------------------------------------------
# Deterministic parameter construction
# -----------------------------------------------------------------------------
def init_params(key, in_channels, out_channels, kernel_size=7):
    group_channels = 16
    groups = out_channels // group_channels
    red = out_channels // 4
    K2 = kernel_size * kernel_size

    params = {"lateral": [], "inv": []}
    keys = jax.random.split(key, 4 * len(in_channels))
    for i, cin in enumerate(in_channels):
        k_lat, k_w1, k_w2, k_b2 = keys[4 * i:4 * i + 4]
        params["lateral"].append({
            "w": jax.random.normal(k_lat, (cin, out_channels), jnp.float32) * 0.1,
            "b": 0.01 * jnp.arange(out_channels, dtype=jnp.float32),
        })
        params["inv"].append({
            "w1": jax.random.normal(k_w1, (out_channels, red), jnp.float32) * 0.1,
            "bn_gamma": 1.0 + 0.05 * jnp.arange(red, dtype=jnp.float32),
            "bn_beta": 0.01 * jnp.arange(red, dtype=jnp.float32),
            "bn_mean": 0.02 * jnp.arange(red, dtype=jnp.float32),
            "bn_var": 1.0 + 0.03 * jnp.arange(red, dtype=jnp.float32),
            "w2": jax.random.normal(k_w2, (red, groups * K2), jnp.float32) * 0.1,
            "b2": jax.random.normal(k_b2, (groups * K2,), jnp.float32) * 0.01,
        })
    return params


# -----------------------------------------------------------------------------
# Pure-JAX reference (mirrors the PyTorch module) for a correctness check
# -----------------------------------------------------------------------------
def _reference_involution(x, p, K):
    B, H, W, C = x.shape
    GC = 16
    pad = (K - 1) // 2
    eps = 1e-5
    t = jnp.einsum('bhwc,cr->bhwr', x, p["w1"])
    t = (t - p["bn_mean"]) * (p["bn_gamma"] / jnp.sqrt(p["bn_var"] + eps)) + p["bn_beta"]
    t = jnp.maximum(t, 0.0)
    wmap = jnp.einsum('bhwr,ro->bhwo', t, p["w2"]) + p["b2"]     # (g, k) order
    xpad = jnp.pad(x, ((0, 0), (pad, pad), (pad, pad), (0, 0)))
    out = jnp.zeros((B, H, W, C), jnp.float32)
    for kh in range(K):
        for kw in range(K):
            k = kh * K + kw
            wk = jnp.repeat(wmap[..., k::K * K], GC, axis=-1)    # (B,H,W,C)
            out = out + wk * xpad[:, kh:kh + H, kw:kw + W, :]
    return out


def fpn_involution_reference(inputs_nchw, params, num_outs, kernel_size=7):
    feats = [jnp.transpose(x, (0, 2, 3, 1)) for x in inputs_nchw]
    laterals = [jnp.einsum('bhwc,co->bhwo', f, lp["w"]) + lp["b"]
                for f, lp in zip(feats, params["lateral"])]
    n = len(laterals)
    for i in range(n - 1, 0, -1):
        H, W = laterals[i - 1].shape[1:3]
        laterals[i - 1] = laterals[i - 1] + _upsample_nearest_nhwc(laterals[i], H, W)
    outs = [_reference_involution(laterals[i], params["inv"][i], kernel_size)
            for i in range(n)]
    for _ in range(num_outs - n):
        outs.append(outs[-1][:, ::2, ::2, :])
    return tuple(jnp.transpose(o, (0, 3, 1, 2)) for o in outs)


if __name__ == "__main__":
    # FPN config: in_channels=[4, 8], out_channels=16 (=> involution groups=1),
    # num_outs=2, involution kernel_size=7, stride=1.
    in_channels = [4, 8]
    spatial = [16, 8]
    out_channels = 16
    num_outs = 2
    batch = 2

    key = jax.random.PRNGKey(0)
    in_keys = jax.random.split(key, len(in_channels))
    inputs = [jax.random.normal(in_keys[i], (batch, c, s, s), jnp.float32)
              for i, (c, s) in enumerate(zip(in_channels, spatial))]

    params = init_params(jax.random.PRNGKey(1), in_channels, out_channels)

    outs = fpn_involution_forward(inputs, params, num_outs)
    for o in outs:
        jax.block_until_ready(o)

    expected = [(batch, out_channels, s, s) for s in spatial]
    assert [tuple(o.shape) for o in outs] == expected, \
        f"got {[o.shape for o in outs]}, expected {expected}"

    refs = fpn_involution_reference(inputs, params, num_outs)
    for lvl, (o, r) in enumerate(zip(outs, refs)):
        assert bool(jnp.all(jnp.isfinite(o)))
        max_diff = float(jnp.max(jnp.abs(o - r)))
        assert jnp.allclose(o, r, atol=3e-3, rtol=3e-2), \
            f"level {lvl}: max abs diff {max_diff}"

    print("KERNEL_OK")
</pallas_src>

<mosaic_0001>
module attributes {stable_mosaic.version = 11 : i64} {
  func.func @_matmul_bias_kernel(%arg0: i32, %arg1: memref<512x4xf32, #tpu.memory_space<vmem>>, %arg2: memref<4x16xf32, #tpu.memory_space<vmem>>, %arg3: memref<1x16xf32, #tpu.memory_space<vmem>>, %arg4: memref<512x16xf32, #tpu.memory_space<vmem>>) attributes {dimension_semantics = [#tpu.dimension_semantics<parallel>], iteration_bounds = array<i64: 1>, scalar_prefetch = 0 : i64, scratch_operands = 0 : i64, tpu.core_type = #tpu.core_type<tc>, window_params = [{transform_indices = @transform_0, window_bounds = array<i64: 512, 4>}, {pipeline_mode = #tpu.pipeline_mode<synchronous>, transform_indices = @transform_1, window_bounds = array<i64: 4, 16>}, {pipeline_mode = #tpu.pipeline_mode<synchronous>, transform_indices = @transform_2, window_bounds = array<i64: 1, 16>}, {transform_indices = @transform_3, window_bounds = array<i64: 512, 16>}]} {
    %c0 = arith.constant 0 : index
    %c0_0 = arith.constant 0 : index
    %0 = vector.load %arg1[%c0, %c0_0] : memref<512x4xf32, #tpu.memory_space<vmem>>, vector<512x4xf32>
    %c0_1 = arith.constant 0 : index
    %c0_2 = arith.constant 0 : index
    %1 = vector.load %arg2[%c0_1, %c0_2] : memref<4x16xf32, #tpu.memory_space<vmem>>, vector<4x16xf32>
    %cst = arith.constant dense<0.000000e+00> : vector<512x16xf32>
    %2 = tpu.matmul %0, %1, %cst {dimension_numbers = #tpu.dot_dimension_numbers<[1], [0], [0], [1], [0, 0, 1, 1], [], []>} : vector<512x4xf32>, vector<4x16xf32>, vector<512x16xf32> -> vector<512x16xf32>
    %c0_3 = arith.constant 0 : index
    %c0_4 = arith.constant 0 : index
    %3 = vector.load %arg3[%c0_3, %c0_4] : memref<1x16xf32, #tpu.memory_space<vmem>>, vector<1x16xf32>
    %4 = vector.broadcast %3 : vector<1x16xf32> to vector<512x16xf32>
    %5 = arith.addf %2, %4 : vector<512x16xf32>
    %c0_5 = arith.constant 0 : index
    %c0_6 = arith.constant 0 : index
    %6 = vector.load %arg4[%c0_5, %c0_6] : memref<512x16xf32, #tpu.memory_space<vmem>>, vector<512x16xf32>
    tpu.vector_store %arg4[%c0_5, %c0_6], %5 {strides = array<i32>} : memref<512x16xf32, #tpu.memory_space<vmem>>, vector<512x16xf32>,
    return
  }
  func.func @transform_0(%arg0: i32) -> (i32, i32) {
    %c0_i32 = arith.constant 0 : i32
    %c0_i32_0 = arith.constant 0 : i32
    return %arg0, %c0_i32 : i32, i32
  }
  func.func @transform_1(%arg0: i32) -> (i32, i32) {
    %c0_i32 = arith.constant 0 : i32
    %c0_i32_0 = arith.constant 0 : i32
    %c0_i32_1 = arith.constant 0 : i32
    return %c0_i32, %c0_i32_0 : i32, i32
  }
  func.func @transform_2(%arg0: i32) -> (i32, i32) {
    %c0_i32 = arith.constant 0 : i32
    %c0_i32_0 = arith.constant 0 : i32
    %c0_i32_1 = arith.constant 0 : i32
    return %c0_i32, %c0_i32_0 : i32, i32
  }
  func.func @transform_3(%arg0: i32) -> (i32, i32) {
    %c0_i32 = arith.constant 0 : i32
    %c0_i32_0 = arith.constant 0 : i32
    return %arg0, %c0_i32 : i32, i32
  }
}

</mosaic_0001>

<bundles_post_ra>
// kernel: tpu_custom_call.1
= control target key start
LH: loop header
LB: loop body
LE: loop exit
PB: predicated region body
PF: predicated region fallthrough
CT: control target
= control target key end

     0   :  { %vm276_vm0 = vcmask 1043456   ;;  %vm83_vm1 = vcmask 31744   ;;  %vm489_vm2 = vcmask 130048   ;;  %s1231_s1 = inlined_call_operand.vmem [shape: f32[4,16], index: 1, kind: input, shape index: {}]   ;;  %s1232_s0 = inlined_call_operand.vmem [shape: f32[512,4], index: 0, kind: input, shape index: {}]   ;;  %s1233_s2 = inlined_call_operand.vmem [shape: f32[1,16], index: 2, kind: input, shape index: {}]   ;;  %s1234_s3 = inlined_call_operand.vmem [shape: f32[512,16], index: 3, kind: output, shape index: {}]  }
   0x1   :  { %v78_v0 = vld [vmem:[%s1231_s1] sm:$0xf]  ;;  %v47_v5 = vld [vmem:[%s1232_s0 + $0x108] sm:$0xff]  ;;  %v48_v9 = vld [vmem:[%s1232_s0 + $0x110] sm:$0xff] }
   0x2   :  { %v46_v1 = vld [vmem:[%s1232_s0 + $0x100] sm:$0xff]  ;;  %624 = vmatpush.msk.msra.mxu2 %vm276_vm0, %v78_v0  ;;  %625 = vmatpush.msk.msra.mxu3 %vm276_vm0, %v78_v0  ;;  %v63_v6 = vld [vmem:[%s1232_s0 + $0x188] sm:$0xff]  ;;  %v64_v10 = vld [vmem:[%s1232_s0 + $0x190] sm:$0xff] }
   0x3   :  { %v62_v2 = vld [vmem:[%s1232_s0 + $0x180] sm:$0xff]  ;;  %591 = vmatmul.msk.f32.vlgmr.msra.gmra.mxu2 %vm83_vm1, %v46_v1  ;;  %558 = vmatpush.msk.msra.mxu0 %vm276_vm0, %v78_v0  ;;  %v15_v7 = vld [vmem:[%s1232_s0 + $0x8] sm:$0xff]  ;;  %v16_v11 = vld [vmem:[%s1232_s0 + $0x10] sm:$0xff] }
   0x4   :  { %v14_v3 = vld [vmem:[%s1232_s0] sm:$0xff]  ;;  %607 = vmatmul.msk.f32.vlgmr.msra.gmra.mxu3 %vm83_vm1, %v62_v2  ;;  %623 = vmatpush.msk.msra.mxu1 %vm276_vm0, %v78_v0  ;;  %v31_v8 = vld [vmem:[%s1232_s0 + $0x88] sm:$0xff]  ;;  %v32_v12 = vld [vmem:[%s1232_s0 + $0x90] sm:$0xff] }
   0x5   :  { %v30_v4 = vld [vmem:[%s1232_s0 + $0x80] sm:$0xff]  ;;  %559 = vmatmul.msk.f32.vlgmr.msra.gmra.mxu0 %vm83_vm1, %v14_v3  ;;  %v49_v13 = vld [vmem:[%s1232_s0 + $0x118] sm:$0xff]  ;;  %v51_v21 = vld [vmem:[%s1232_s0 + $0x128] sm:$0xff] }
   0x6   :  { %575 = vmatmul.msk.f32.vlgmr.msra.gmra.mxu1 %vm83_vm1, %v30_v4  ;;  %v65_v14 = vld [vmem:[%s1232_s0 + $0x198] sm:$0xff]  ;;  %v50_v17 = vld [vmem:[%s1232_s0 + $0x120] sm:$0xff]  ;;  %v67_v22 = vld [vmem:[%s1232_s0 + $0x1a8] sm:$0xff] }
   0x7   :  { %v17_v15 = vld [vmem:[%s1232_s0 + $0x18] sm:$0xff]  ;;  %v66_v18 = vld [vmem:[%s1232_s0 + $0x1a0] sm:$0xff]  ;;  %v19_v23 = vld [vmem:[%s1232_s0 + $0x28] sm:$0xff] }
   0x8   :  { %v33_v16 = vld [vmem:[%s1232_s0 + $0x98] sm:$0xff]  ;;  %v18_v19 = vld [vmem:[%s1232_s0 + $0x20] sm:$0xff]  ;;  %v35_v24 = vld [vmem:[%s1232_s0 + $0xa8] sm:$0xff] }
   0x9   :  { %v34_v20 = vld [vmem:[%s1232_s0 + $0xa0] sm:$0xff]  ;;  %v52_v25 = vld [vmem:[%s1232_s0 + $0x130] sm:$0xff]  ;;  %v53_v29 = vld [vmem:[%s1232_s0 + $0x138] sm:$0xff] }
   0xa   :  { %v68_v26 = vld [vmem:[%s1232_s0 + $0x1b0] sm:$0xff]  ;;  %v69_v30 = vld [vmem:[%s1232_s0 + $0x1b8] sm:$0xff]  ;;  %v54_v33 = vld [vmem:[%s1232_s0 + $0x140] sm:$0xff] }
   0xb   :  { %592 = vmatmul.msk.f32.gmra.mxu2 %vm83_vm1, %v47_v5  ;;  %v20_v27 = vld [vmem:[%s1232_s0 + $0x30] sm:$0xff]  ;;  %v21_v31 = vld [vmem:[%s1232_s0 + $0x38] sm:$0xff]  ;;  %v70_v34 = vld [vmem:[%s1232_s0 + $0x1c0] sm:$0xff] }
   0xc   :  { %608 = vmatmul.msk.f32.gmra.mxu3 %vm83_vm1, %v63_v6  ;;  %v36_v28 = vld [vmem:[%s1232_s0 + $0xb0] sm:$0xff]  ;;  %v37_v32 = vld [vmem:[%s1232_s0 + $0xb8] sm:$0xff]  ;;  %v22_v35 = vld [vmem:[%s1232_s0 + $0x40] sm:$0xff] }
   0xd   :  { %560 = vmatmul.msk.f32.gmra.mxu0 %vm83_vm1, %v15_v7  ;;  %v38_v36 = vld [vmem:[%s1232_s0 + $0xc0] sm:$0xff]  ;;  %v55_v37 = vld [vmem:[%s1232_s0 + $0x148] sm:$0xff]  ;;  %v56_v41 = vld [vmem:[%s1232_s0 + $0x150] sm:$0xff] }
   0xe   :  { %576 = vmatmul.msk.f32.gmra.mxu1 %vm83_vm1, %v31_v8  ;;  %v71_v38 = vld [vmem:[%s1232_s0 + $0x1c8] sm:$0xff]  ;;  %v72_v42 = vld [vmem:[%s1232_s0 + $0x1d0] sm:$0xff]  ;;  %v57_v45 = vld [vmem:[%s1232_s0 + $0x158] sm:$0xff] }
   0xf   :  { %v23_v39 = vld [vmem:[%s1232_s0 + $0x48] sm:$0xff]  ;;  %v24_v43 = vld [vmem:[%s1232_s0 + $0x50] sm:$0xff]  ;;  %v73_v46 = vld [vmem:[%s1232_s0 + $0x1d8] sm:$0xff] }
  0x10   :  { %v39_v40 = vld [vmem:[%s1232_s0 + $0xc8] sm:$0xff]  ;;  %v40_v44 = vld [vmem:[%s1232_s0 + $0xd0] sm:$0xff]  ;;  %v25_v47 = vld [vmem:[%s1232_s0 + $0x58] sm:$0xff] }
  0x11   :  { %v41_v48 = vld [vmem:[%s1232_s0 + $0xd8] sm:$0xff]  ;;  %v58_v49 = vld [vmem:[%s1232_s0 + $0x160] sm:$0xff]  ;;  %v59_v53 = vld [vmem:[%s1232_s0 + $0x168] sm:$0xff] }
  0x12   :  { %v74_v50 = vld [vmem:[%s1232_s0 + $0x1e0] sm:$0xff]  ;;  %v75_v54 = vld [vmem:[%s1232_s0 + $0x1e8] sm:$0xff]  ;;  %v60_v57 = vld [vmem:[%s1232_s0 + $0x170] sm:$0xff] }
  0x13   :  { %593 = vmatmul.msk.f32.gmra.mxu2 %vm83_vm1, %v48_v9  ;;  %v26_v51 = vld [vmem:[%s1232_s0 + $0x60] sm:$0xff]  ;;  %v27_v55 = vld [vmem:[%s1232_s0 + $0x68] sm:$0xff]  ;;  %v76_v58 = vld [vmem:[%s1232_s0 + $0x1f0] sm:$0xff] }
  0x14   :  { %609 = vmatmul.msk.f32.gmra.mxu3 %vm83_vm1, %v64_v10  ;;  %v42_v52 = vld [vmem:[%s1232_s0 + $0xe0] sm:$0xff]  ;;  %v43_v56 = vld [vmem:[%s1232_s0 + $0xe8] sm:$0xff]  ;;  %v28_v59 = vld [vmem:[%s1232_s0 + $0x70] sm:$0xff] }
  0x15   :  { %561 = vmatmul.msk.f32.gmra.mxu0 %vm83_vm1, %v16_v11  ;;  %v44_v60 = vld [vmem:[%s1232_s0 + $0xf0] sm:$0xff]  ;;  %v61_v61 = vld [vmem:[%s1232_s0 + $0x178] sm:$0xff]  ;;  %v909_v1 = vld [vmem:[%s1233_s2] ss:$0 sm:$0xff] }
  0x16   :  { %577 = vmatmul.msk.f32.gmra.mxu1 %vm83_vm1, %v32_v12  ;;  %v77_v62 = vld [vmem:[%s1232_s0 + $0x1f8] sm:$0xff] }
  0x17   :  { %v29_v63 = vld [vmem:[%s1232_s0 + $0x78] sm:$0xff] }
  0x18   :  { %v45_v0 = vld [vmem:[%s1232_s0 + $0xf8] sm:$0xff] }
  0x1b   :  { %594 = vmatmul.msk.f32.gmra.mxu2 %vm83_vm1, %v49_v13 }
  0x1c   :  { %610 = vmatmul.msk.f32.gmra.mxu3 %vm83_vm1, %v65_v14 }
  0x1d   :  { %562 = vmatmul.msk.f32.gmra.mxu0 %vm83_vm1, %v17_v15 }
  0x1e   :  { %578 = vmatmul.msk.f32.gmra.mxu1 %vm83_vm1, %v33_v16 }
  0x23   :  { %595 = vmatmul.msk.f32.gmra.mxu2 %vm83_vm1, %v50_v17 }
  0x24   :  { %611 = vmatmul.msk.f32.gmra.mxu3 %vm83_vm1, %v66_v18 }
  0x25   :  { %563 = vmatmul.msk.f32.gmra.mxu0 %vm83_vm1, %v18_v19 }
  0x26   :  { %579 = vmatmul.msk.f32.gmra.mxu1 %vm83_vm1, %v34_v20 }
  0x2b   :  { %596 = vmatmul.msk.f32.gmra.mxu2 %vm83_vm1, %v51_v21 }
  0x2c   :  { %612 = vmatmul.msk.f32.gmra.mxu3 %vm83_vm1, %v67_v22 }
  0x2d   :  { %564 = vmatmul.msk.f32.gmra.mxu0 %vm83_vm1, %v19_v23 }
  0x2e   :  { %580 = vmatmul.msk.f32.gmra.mxu1 %vm83_vm1, %v35_v24 }
  0x33   :  { %597 = vmatmul.msk.f32.gmra.mxu2 %vm83_vm1, %v52_v25 }
  0x34   :  { %613 = vmatmul.msk.f32.gmra.mxu3 %vm83_vm1, %v68_v26 }
  0x35   :  { %565 = vmatmul.msk.f32.gmra.mxu0 %vm83_vm1, %v20_v27 }
  0x36   :  { %581 = vmatmul.msk.f32.gmra.mxu1 %vm83_vm1, %v36_v28 }
  0x3b   :  { %598 = vmatmul.msk.f32.gmra.mxu2 %vm83_vm1, %v53_v29 }
  0x3c   :  { %614 = vmatmul.msk.f32.gmra.mxu3 %vm83_vm1, %v69_v30 }
  0x3d   :  { %566 = vmatmul.msk.f32.gmra.mxu0 %vm83_vm1, %v21_v31 }
  0x3e   :  { %582 = vmatmul.msk.f32.gmra.mxu1 %vm83_vm1, %v37_v32 }
  0x43   :  { %599 = vmatmul.msk.f32.gmra.mxu2 %vm83_vm1, %v54_v33 }
  0x44   :  { %615 = vmatmul.msk.f32.gmra.mxu3 %vm83_vm1, %v70_v34 }
  0x45   :  { %567 = vmatmul.msk.f32.gmra.mxu0 %vm83_vm1, %v22_v35 }
  0x46   :  { %583 = vmatmul.msk.f32.gmra.mxu1 %vm83_vm1, %v38_v36 }
  0x4b   :  { %600 = vmatmul.msk.f32.gmra.mxu2 %vm83_vm1, %v55_v37 }
  0x4c   :  { %616 = vmatmul.msk.f32.gmra.mxu3 %vm83_vm1, %v71_v38 }
  0x4d   :  { %568 = vmatmul.msk.f32.gmra.mxu0 %vm83_vm1, %v23_v39 }
  0x4e   :  { %584 = vmatmul.msk.f32.gmra.mxu1 %vm83_vm1, %v39_v40 }
  0x53   :  { %601 = vmatmul.msk.f32.gmra.mxu2 %vm83_vm1, %v56_v41 }
  0x54   :  { %617 = vmatmul.msk.f32.gmra.mxu3 %vm83_vm1, %v72_v42 }
  0x55   :  { %569 = vmatmul.msk.f32.gmra.mxu0 %vm83_vm1, %v24_v43 }
  0x56   :  { %585 = vmatmul.msk.f32.gmra.mxu1 %vm83_vm1, %v40_v44 }
  0x5b   :  { %602 = vmatmul.msk.f32.gmra.mxu2 %vm83_vm1, %v57_v45 }
  0x5c   :  { %618 = vmatmul.msk.f32.gmra.mxu3 %vm83_vm1, %v73_v46 }
  0x5d   :  { %570 = vmatmul.msk.f32.gmra.mxu0 %vm83_vm1, %v25_v47 }
  0x5e   :  { %586 = vmatmul.msk.f32.gmra.mxu1 %vm83_vm1, %v41_v48 }
  0x63   :  { %603 = vmatmul.msk.f32.gmra.mxu2 %vm83_vm1, %v58_v49 }
  0x64   :  { %619 = vmatmul.msk.f32.gmra.mxu3 %vm83_vm1, %v74_v50 }
  0x65   :  { %571 = vmatmul.msk.f32.gmra.mxu0 %vm83_vm1, %v26_v51 }
  0x66   :  { %587 = vmatmul.msk.f32.gmra.mxu1 %vm83_vm1, %v42_v52 }
  0x6b   :  { %604 = vmatmul.msk.f32.gmra.mxu2 %vm83_vm1, %v59_v53 }
  0x6c   :  { %620 = vmatmul.msk.f32.gmra.mxu3 %vm83_vm1, %v75_v54 }
  0x6d   :  { %572 = vmatmul.msk.f32.gmra.mxu0 %vm83_vm1, %v27_v55 }
  0x6e   :  { %588 = vmatmul.msk.f32.gmra.mxu1 %vm83_vm1, %v43_v56 }
  0x73   :  { %605 = vmatmul.msk.f32.gmra.mxu2 %vm83_vm1, %v60_v57 }
  0x74   :  { %621 = vmatmul.msk.f32.gmra.mxu3 %vm83_vm1, %v76_v58 }
  0x75   :  { %573 = vmatmul.msk.f32.gmra.mxu0 %vm83_vm1, %v28_v59 }
  0x76   :  { %589 = vmatmul.msk.f32.gmra.mxu1 %vm83_vm1, %v44_v60 }
  0x7b   :  { %606 = vmatmul.msk.f32.gmra.mxu2 %vm83_vm1, %v61_v61 }
  0x7c   :  { %622 = vmatmul.msk.f32.gmra.mxu3 %vm83_vm1, %v77_v62 }
  0x7d   :  { %574 = vmatmul.msk.f32.gmra.mxu0 %vm83_vm1, %v29_v63 }
  0x7e   :  { %590 = vmatmul.msk.f32.gmra.mxu1 %vm83_vm1, %v45_v0 }
  0x82   :  { %v297_v2 = vpop.f32.mrf.mxu0 }
  0x83   :  { %v345_v3 = vpop.f32.mrf.mxu1  ;;  %v298_v4 = vadd.f32 %v909_v1, %v297_v2 }
  0x84   :  { %v346_v5 = vadd.f32 %v909_v1, %v345_v3 }
  0x85   :  { %490 = vst.msk [vmem:[%s1234_s3] sm:$0xff] %vm489_vm2, %v298_v4 }
  0x86   :  { %506 = vst.msk [vmem:[%s1234_s3 + $0x80] sm:$0xff] %vm489_vm2, %v346_v5  ;;  %v393_v6 = vpop.f32.mrf.mxu2 }
  0x87   :  { %v441_v7 = vpop.f32.mrf.mxu3  ;;  %v394_v8 = vadd.f32 %v909_v1, %v393_v6 }
  0x88   :  { %v442_v9 = vadd.f32 %v909_v1, %v441_v7 }
  0x89   :  { %522 = vst.msk [vmem:[%s1234_s3 + $0x100] sm:$0xff] %vm489_vm2, %v394_v8 }
  0x8a   :  { %538 = vst.msk [vmem:[%s1234_s3 + $0x180] sm:$0xff] %vm489_vm2, %v442_v9  ;;  %v300_v10 = vpop.f32.mrf.mxu0 }
  0x8b   :  { %v348_v11 = vpop.f32.mrf.mxu1  ;;  %v301_v12 = vadd.f32 %v909_v1, %v300_v10 }
  0x8c   :  { %v349_v13 = vadd.f32 %v909_v1, %v348_v11 }
  0x8d   :  { %491 = vst.msk [vmem:[%s1234_s3 + $0x8] sm:$0xff] %vm489_vm2, %v301_v12 }
  0x8e   :  { %507 = vst.msk [vmem:[%s1234_s3 + $0x88] sm:$0xff] %vm489_vm2, %v349_v13  ;;  %v396_v14 = vpop.f32.mrf.mxu2 }
  0x8f   :  { %v444_v15 = vpop.f32.mrf.mxu3  ;;  %v397_v16 = vadd.f32 %v909_v1, %v396_v14 }
  0x90   :  { %v445_v17 = vadd.f32 %v909_v1, %v444_v15 }
  0x91   :  { %523 = vst.msk [vmem:[%s1234_s3 + $0x108] sm:$0xff] %vm489_vm2, %v397_v16 }
  0x92   :  { %539 = vst.msk [vmem:[%s1234_s3 + $0x188] sm:$0xff] %vm489_vm2, %v445_v17  ;;  %v303_v18 = vpop.f32.mrf.mxu0 }
  0x93   :  { %v351_v19 = vpop.f32.mrf.mxu1  ;;  %v304_v20 = vadd.f32 %v909_v1, %v303_v18 }
  0x94   :  { %v352_v21 = vadd.f32 %v909_v1, %v351_v19 }
  0x95   :  { %492 = vst.msk [vmem:[%s1234_s3 + $0x10] sm:$0xff] %vm489_vm2, %v304_v20 }
  0x96   :  { %508 = vst.msk [vmem:[%s1234_s3 + $0x90] sm:$0xff] %vm489_vm2, %v352_v21  ;;  %v399_v22 = vpop.f32.mrf.mxu2 }
  0x97   :  { %v447_v23 = vpop.f32.mrf.mxu3  ;;  %v400_v24 = vadd.f32 %v909_v1, %v399_v22 }
  0x98   :  { %v448_v25 = vadd.f32 %v909_v1, %v447_v23 }
  0x99   :  { %524 = vst.msk [vmem:[%s1234_s3 + $0x110] sm:$0xff] %vm489_vm2, %v400_v24 }
  0x9a   :  { %540 = vst.msk [vmem:[%s1234_s3 + $0x190] sm:$0xff] %vm489_vm2, %v448_v25  ;;  %v306_v26 = vpop.f32.mrf.mxu0 }
  0x9b   :  { %v354_v27 = vpop.f32.mrf.mxu1  ;;  %v307_v28 = vadd.f32 %v909_v1, %v306_v26 }
  0x9c   :  { %v355_v29 = vadd.f32 %v909_v1, %v354_v27 }
  0x9d   :  { %493 = vst.msk [vmem:[%s1234_s3 + $0x18] sm:$0xff] %vm489_vm2, %v307_v28 }
  0x9e   :  { %509 = vst.msk [vmem:[%s1234_s3 + $0x98] sm:$0xff] %vm489_vm2, %v355_v29  ;;  %v402_v30 = vpop.f32.mrf.mxu2 }
  0x9f   :  { %v450_v31 = vpop.f32.mrf.mxu3  ;;  %v403_v32 = vadd.f32 %v909_v1, %v402_v30 }
  0xa0   :  { %v451_v33 = vadd.f32 %v909_v1, %v450_v31 }
  0xa1   :  { %525 = vst.msk [vmem:[%s1234_s3 + $0x118] sm:$0xff] %vm489_vm2, %v403_v32 }
  0xa2   :  { %541 = vst.msk [vmem:[%s1234_s3 + $0x198] sm:$0xff] %vm489_vm2, %v451_v33  ;;  %v309_v34 = vpop.f32.mrf.mxu0 }
  0xa3   :  { %v357_v35 = vpop.f32.mrf.mxu1  ;;  %v310_v36 = vadd.f32 %v909_v1, %v309_v34 }
  0xa4   :  { %v358_v37 = vadd.f32 %v909_v1, %v357_v35 }
  0xa5   :  { %494 = vst.msk [vmem:[%s1234_s3 + $0x20] sm:$0xff] %vm489_vm2, %v310_v36 }
  0xa6   :  { %510 = vst.msk [vmem:[%s1234_s3 + $0xa0] sm:$0xff] %vm489_vm2, %v358_v37  ;;  %v405_v38 = vpop.f32.mrf.mxu2 }
  0xa7   :  { %v453_v39 = vpop.f32.mrf.mxu3  ;;  %v406_v40 = vadd.f32 %v909_v1, %v405_v38 }
  0xa8   :  { %v454_v41 = vadd.f32 %v909_v1, %v453_v39 }
  0xa9   :  { %526 = vst.msk [vmem:[%s1234_s3 + $0x120] sm:$0xff] %vm489_vm2, %v406_v40 }
  0xaa   :  { %542 = vst.msk [vmem:[%s1234_s3 + $0x1a0] sm:$0xff] %vm489_vm2, %v454_v41  ;;  %v312_v42 = vpop.f32.mrf.mxu0 }
  0xab   :  { %v360_v43 = vpop.f32.mrf.mxu1  ;;  %v313_v44 = vadd.f32 %v909_v1, %v312_v42 }
  0xac   :  { %v361_v45 = vadd.f32 %v909_v1, %v360_v43 }
  0xad   :  { %495 = vst.msk [vmem:[%s1234_s3 + $0x28] sm:$0xff] %vm489_vm2, %v313_v44 }
  0xae   :  { %511 = vst.msk [vmem:[%s1234_s3 + $0xa8] sm:$0xff] %vm489_vm2, %v361_v45  ;;  %v408_v46 = vpop.f32.mrf.mxu2 }
  0xaf   :  { %v456_v47 = vpop.f32.mrf.mxu3  ;;  %v409_v48 = vadd.f32 %v909_v1, %v408_v46 }
  0xb0   :  { %v457_v49 = vadd.f32 %v909_v1, %v456_v47 }
  0xb1   :  { %527 = vst.msk [vmem:[%s1234_s3 + $0x128] sm:$0xff] %vm489_vm2, %v409_v48 }
  0xb2   :  { %543 = vst.msk [vmem:[%s1234_s3 + $0x1a8] sm:$0xff] %vm489_vm2, %v457_v49  ;;  %v315_v50 = vpop.f32.mrf.mxu0 }
  0xb3   :  { %v363_v51 = vpop.f32.mrf.mxu1  ;;  %v316_v52 = vadd.f32 %v909_v1, %v315_v50 }
  0xb4   :  { %v364_v53 = vadd.f32 %v909_v1, %v363_v51 }
  0xb5   :  { %496 = vst.msk [vmem:[%s1234_s3 + $0x30] sm:$0xff] %vm489_vm2, %v316_v52 }
  0xb6   :  { %512 = vst.msk [vmem:[%s1234_s3 + $0xb0] sm:$0xff] %vm489_vm2, %v364_v53  ;;  %v411_v54 = vpop.f32.mrf.mxu2 }
  0xb7   :  { %v459_v55 = vpop.f32.mrf.mxu3  ;;  %v412_v56 = vadd.f32 %v909_v1, %v411_v54 }
  0xb8   :  { %v460_v57 = vadd.f32 %v909_v1, %v459_v55 }
  0xb9   :  { %528 = vst.msk [vmem:[%s1234_s3 + $0x130] sm:$0xff] %vm489_vm2, %v412_v56 }
  0xba   :  { %544 = vst.msk [vmem:[%s1234_s3 + $0x1b0] sm:$0xff] %vm489_vm2, %v460_v57  ;;  %v318_v58 = vpop.f32.mrf.mxu0 }
  0xbb   :  { %v366_v59 = vpop.f32.mrf.mxu1  ;;  %v319_v60 = vadd.f32 %v909_v1, %v318_v58 }
  0xbc   :  { %v367_v61 = vadd.f32 %v909_v1, %v366_v59 }
  0xbd   :  { %497 = vst.msk [vmem:[%s1234_s3 + $0x38] sm:$0xff] %vm489_vm2, %v319_v60 }
  0xbe   :  { %513 = vst.msk [vmem:[%s1234_s3 + $0xb8] sm:$0xff] %vm489_vm2, %v367_v61  ;;  %v414_v62 = vpop.f32.mrf.mxu2 }
  0xbf   :  { %v462_v63 = vpop.f32.mrf.mxu3  ;;  %v415_v0 = vadd.f32 %v909_v1, %v414_v62 }
  0xc0   :  { %v463_v2 = vadd.f32 %v909_v1, %v462_v63 }
  0xc1   :  { %529 = vst.msk [vmem:[%s1234_s3 + $0x138] sm:$0xff] %vm489_vm2, %v415_v0 }
  0xc2   :  { %545 = vst.msk [vmem:[%s1234_s3 + $0x1b8] sm:$0xff] %vm489_vm2, %v463_v2  ;;  %v321_v3 = vpop.f32.mrf.mxu0 }
  0xc3   :  { %v369_v4 = vpop.f32.mrf.mxu1  ;;  %v322_v5 = vadd.f32 %v909_v1, %v321_v3 }
  0xc4   :  { %v370_v6 = vadd.f32 %v909_v1, %v369_v4 }
  0xc5   :  { %498 = vst.msk [vmem:[%s1234_s3 + $0x40] sm:$0xff] %vm489_vm2, %v322_v5 }
  0xc6   :  { %514 = vst.msk [vmem:[%s1234_s3 + $0xc0] sm:$0xff] %vm489_vm2, %v370_v6  ;;  %v417_v7 = vpop.f32.mrf.mxu2 }
  0xc7   :  { %v465_v8 = vpop.f32.mrf.mxu3  ;;  %v418_v9 = vadd.f32 %v909_v1, %v417_v7 }
  0xc8   :  { %v466_v10 = vadd.f32 %v909_v1, %v465_v8 }
  0xc9   :  { %530 = vst.msk [vmem:[%s1234_s3 + $0x140] sm:$0xff] %vm489_vm2, %v418_v9 }
  0xca   :  { %546 = vst.msk [vmem:[%s1234_s3 + $0x1c0] sm:$0xff] %vm489_vm2, %v466_v10  ;;  %v324_v11 = vpop.f32.mrf.mxu0 }
  0xcb   :  { %v372_v12 = vpop.f32.mrf.mxu1  ;;  %v325_v13 = vadd.f32 %v909_v1, %v324_v11 }
  0xcc   :  { %v373_v14 = vadd.f32 %v909_v1, %v372_v12 }
  0xcd   :  { %499 = vst.msk [vmem:[%s1234_s3 + $0x48] sm:$0xff] %vm489_vm2, %v325_v13 }
  0xce   :  { %515 = vst.msk [vmem:[%s1234_s3 + $0xc8] sm:$0xff] %vm489_vm2, %v373_v14  ;;  %v420_v15 = vpop.f32.mrf.mxu2 }
  0xcf   :  { %v468_v16 = vpop.f32.mrf.mxu3  ;;  %v421_v17 = vadd.f32 %v909_v1, %v420_v15 }
  0xd0   :  { %v469_v18 = vadd.f32 %v909_v1, %v468_v16 }
  0xd1   :  { %531 = vst.msk [vmem:[%s1234_s3 + $0x148] sm:$0xff] %vm489_vm2, %v421_v17 }
  0xd2   :  { %547 = vst.msk [vmem:[%s1234_s3 + $0x1c8] sm:$0xff] %vm489_vm2, %v469_v18  ;;  %v327_v19 = vpop.f32.mrf.mxu0 }
  0xd3   :  { %v375_v20 = vpop.f32.mrf.mxu1  ;;  %v328_v21 = vadd.f32 %v909_v1, %v327_v19 }
  0xd4   :  { %v376_v22 = vadd.f32 %v909_v1, %v375_v20 }
  0xd5   :  { %500 = vst.msk [vmem:[%s1234_s3 + $0x50] sm:$0xff] %vm489_vm2, %v328_v21 }
  0xd6   :  { %516 = vst.msk [vmem:[%s1234_s3 + $0xd0] sm:$0xff] %vm489_vm2, %v376_v22  ;;  %v423_v23 = vpop.f32.mrf.mxu2 }
  0xd7   :  { %v471_v24 = vpop.f32.mrf.mxu3  ;;  %v424_v25 = vadd.f32 %v909_v1, %v423_v23 }
  0xd8   :  { %v472_v26 = vadd.f32 %v909_v1, %v471_v24 }
  0xd9   :  { %532 = vst.msk [vmem:[%s1234_s3 + $0x150] sm:$0xff] %vm489_vm2, %v424_v25 }
  0xda   :  { %548 = vst.msk [vmem:[%s1234_s3 + $0x1d0] sm:$0xff] %vm489_vm2, %v472_v26  ;;  %v330_v27 = vpop.f32.mrf.mxu0 }
  0xdb   :  { %v378_v28 = vpop.f32.mrf.mxu1  ;;  %v331_v29 = vadd.f32 %v909_v1, %v330_v27 }
  0xdc   :  { %v379_v30 = vadd.f32 %v909_v1, %v378_v28 }
  0xdd   :  { %501 = vst.msk [vmem:[%s1234_s3 + $0x58] sm:$0xff] %vm489_vm2, %v331_v29 }
  0xde   :  { %517 = vst.msk [vmem:[%s1234_s3 + $0xd8] sm:$0xff] %vm489_vm2, %v379_v30  ;;  %v426_v31 = vpop.f32.mrf.mxu2 }
  0xdf   :  { %v474_v32 = vpop.f32.mrf.mxu3  ;;  %v427_v33 = vadd.f32 %v909_v1, %v426_v31 }
  0xe0   :  { %v475_v34 = vadd.f32 %v909_v1, %v474_v32 }
  0xe1   :  { %533 = vst.msk [vmem:[%s1234_s3 + $0x158] sm:$0xff] %vm489_vm2, %v427_v33 }
  0xe2   :  { %549 = vst.msk [vmem:[%s1234_s3 + $0x1d8] sm:$0xff] %vm489_vm2, %v475_v34  ;;  %v333_v35 = vpop.f32.mrf.mxu0 }
  0xe3   :  { %v381_v36 = vpop.f32.mrf.mxu1  ;;  %v334_v37 = vadd.f32 %v909_v1, %v333_v35 }
  0xe4   :  { %v382_v38 = vadd.f32 %v909_v1, %v381_v36 }
  0xe5   :  { %502 = vst.msk [vmem:[%s1234_s3 + $0x60] sm:$0xff] %vm489_vm2, %v334_v37 }
  0xe6   :  { %518 = vst.msk [vmem:[%s1234_s3 + $0xe0] sm:$0xff] %vm489_vm2, %v382_v38  ;;  %v429_v39 = vpop.f32.mrf.mxu2 }
  0xe7   :  { %v477_v40 = vpop.f32.mrf.mxu3  ;;  %v430_v41 = vadd.f32 %v909_v1, %v429_v39 }
  0xe8   :  { %v478_v42 = vadd.f32 %v909_v1, %v477_v40 }
  0xe9   :  { %534 = vst.msk [vmem:[%s1234_s3 + $0x160] sm:$0xff] %vm489_vm2, %v430_v41 }
  0xea   :  { %550 = vst.msk [vmem:[%s1234_s3 + $0x1e0] sm:$0xff] %vm489_vm2, %v478_v42  ;;  %v336_v43 = vpop.f32.mrf.mxu0 }
  0xeb   :  { %v384_v44 = vpop.f32.mrf.mxu1  ;;  %v337_v45 = vadd.f32 %v909_v1, %v336_v43 }
  0xec   :  { %v385_v46 = vadd.f32 %v909_v1, %v384_v44 }
  0xed   :  { %503 = vst.msk [vmem:[%s1234_s3 + $0x68] sm:$0xff] %vm489_vm2, %v337_v45 }
  0xee   :  { %519 = vst.msk [vmem:[%s1234_s3 + $0xe8] sm:$0xff] %vm489_vm2, %v385_v46  ;;  %v432_v47 = vpop.f32.mrf.mxu2 }
  0xef   :  { %v480_v48 = vpop.f32.mrf.mxu3  ;;  %v433_v49 = vadd.f32 %v909_v1, %v432_v47 }
  0xf0   :  { %v481_v50 = vadd.f32 %v909_v1, %v480_v48 }
  0xf1   :  { %535 = vst.msk [vmem:[%s1234_s3 + $0x168] sm:$0xff] %vm489_vm2, %v433_v49 }
  0xf2   :  { %551 = vst.msk [vmem:[%s1234_s3 + $0x1e8] sm:$0xff] %vm489_vm2, %v481_v50  ;;  %v339_v51 = vpop.f32.mrf.mxu0 }
  0xf3   :  { %v387_v52 = vpop.f32.mrf.mxu1  ;;  %v340_v53 = vadd.f32 %v909_v1, %v339_v51 }
  0xf4   :  { %v388_v54 = vadd.f32 %v909_v1, %v387_v52 }
  0xf5   :  { %504 = vst.msk [vmem:[%s1234_s3 + $0x70] sm:$0xff] %vm489_vm2, %v340_v53 }
  0xf6   :  { %520 = vst.msk [vmem:[%s1234_s3 + $0xf0] sm:$0xff] %vm489_vm2, %v388_v54  ;;  %v435_v55 = vpop.f32.mrf.mxu2 }
  0xf7   :  { %v483_v56 = vpop.f32.mrf.mxu3  ;;  %v436_v57 = vadd.f32 %v909_v1, %v435_v55 }
  0xf8   :  { %v484_v58 = vadd.f32 %v909_v1, %v483_v56 }
  0xf9   :  { %536 = vst.msk [vmem:[%s1234_s3 + $0x170] sm:$0xff] %vm489_vm2, %v436_v57 }
  0xfa   :  { %552 = vst.msk [vmem:[%s1234_s3 + $0x1f0] sm:$0xff] %vm489_vm2, %v484_v58  ;;  %v342_v59 = vpop.f32.mrf.mxu0 }
  0xfb   :  { %v390_v60 = vpop.f32.mrf.mxu1  ;;  %v343_v61 = vadd.f32 %v909_v1, %v342_v59 }
  0xfc   :  { %v391_v62 = vadd.f32 %v909_v1, %v390_v60 }
  0xfd   :  { %505 = vst.msk [vmem:[%s1234_s3 + $0x78] sm:$0xff] %vm489_vm2, %v343_v61 }
  0xfe   :  { %521 = vst.msk [vmem:[%s1234_s3 + $0xf8] sm:$0xff] %vm489_vm2, %v391_v62  ;;  %v438_v63 = vpop.f32.mrf.mxu2 }
  0xff   :  { %v486_v0 = vpop.f32.mrf.mxu3  ;;  %v439_v2 = vadd.f32 %v909_v1, %v438_v63 }
 0x100   :  { %v487_v3 = vadd.f32 %v909_v1, %v486_v0 }
 0x101   :  { %537 = vst.msk [vmem:[%s1234_s3 + $0x178] sm:$0xff] %vm489_vm2, %v439_v2 }
 0x102   :  { %553 = vst.msk [vmem:[%s1234_s3 + $0x1f8] sm:$0xff] %vm489_vm2, %v487_v3 }

</bundles_post_ra>
